<compile_context>
chip_gen: v7x
topology: tpu7x:2x2x1
jax: 0.10.0
libtpu: 0.0.40
codegen_flags: <defaults>
</compile_context>

<pallas_src>
import functools

import jax
import jax.numpy as jnp
from jax import lax
from jax.experimental import pallas as pl
from jax.experimental.pallas import tpu as pltpu

LANES = 128


def _round_up(x, m):
    return ((x + m - 1) // m) * m


def actor_kernel(out_dim, s_ref, w1_ref, b1_ref, w2_ref, b2_ref, u_ref,
                 probs_ref, action_ref):
    B, pad = probs_ref.shape

    # hidden1: Linear(input_dim, hidden_dim) + ReLU (MXU, f32 accumulation).
    # hidden_dim is zero-padded to 128 lanes at init -> lane-dense h slab.
    h = jnp.dot(s_ref[...], w1_ref[...], preferred_element_type=jnp.float32)
    h = jnp.maximum(h + b1_ref[...], 0.0)

    # out: Linear(hidden_dim, out_dim) on a lane-dense 128-wide slab.
    logits = jnp.dot(h, w2_ref[...], preferred_element_type=jnp.float32)
    logits = logits + b2_ref[...]

    lane_ids = lax.broadcasted_iota(jnp.int32, (B, pad), 1)
    valid = lane_ids < out_dim
    neg_big = jnp.float32(-1e30)

    # first softmax (nn.Softmax(dim=-1)); padded lanes masked out.
    # approx reciprocal (EUP slot) is fine for this intermediate value.
    logits = jnp.where(valid, logits, neg_big)
    m1 = jnp.max(logits, axis=-1, keepdims=True)
    e1 = jnp.exp(logits - m1)
    x = e1 * pl.reciprocal(jnp.sum(e1, axis=-1, keepdims=True), approx=True)

    # second softmax (torch.softmax(x, dim=1)). x is in [0,1] -> exp cannot
    # overflow, so no max-subtraction needed. Exact division for the output.
    e2 = jnp.where(valid, jnp.exp(x), 0.0)
    s2 = jnp.sum(e2, axis=-1, keepdims=True)
    probs_ref[...] = e2 / s2

    # fused Categorical(probs).sample(): exponential race.
    #   argmin_i  (-log(u_i)) / p_i   ~  Categorical(p);   p ∝ e2.
    e_noise = -jnp.log(u_ref[...])
    race = e_noise / jnp.where(valid, e2, jnp.float32(1.0))
    race = jnp.where(valid, race, jnp.float32(1e30))
    rmin = jnp.min(race, axis=-1, keepdims=True)
    is_min = jnp.logical_and(race == rmin, valid)
    # ties (measure zero) break to the lowest lane index
    act = jnp.min(jnp.where(is_min, lane_ids, pad), axis=-1, keepdims=True)
    action_ref[...] = act.astype(jnp.int32)


@functools.partial(jax.jit, static_argnames=("out_dim",))
def actor_forward(state, padded_params, out_dim, sample_key):
    """Mirrors Actor.forward: returns (action, probs of the Categorical)."""
    w1p, b1p, w2p, b2p = padded_params
    B, in_dim = state.shape
    hid_p = w1p.shape[1]
    pad = w2p.shape[1]

    # uniforms in (0, 1): strictly positive so -log(u) is finite
    u = jax.random.uniform(sample_key, (B, pad), jnp.float32,
                           minval=1e-7, maxval=1.0)

    vmem = pl.BlockSpec(memory_space=pltpu.MemorySpace.VMEM)
    cost = pl.CostEstimate(
        flops=2 * B * (in_dim * hid_p + hid_p * pad),
        transcendentals=3 * B * pad,
        bytes_accessed=4 * (state.size + w1p.size + b1p.size + w2p.size
                            + b2p.size + u.size + B * pad + B),
    )

    probs_pad, action = pl.pallas_call(
        functools.partial(actor_kernel, out_dim),
        out_shape=(
            jax.ShapeDtypeStruct((B, pad), jnp.float32),
            jax.ShapeDtypeStruct((B, 1), jnp.int32),
        ),
        in_specs=[vmem] * 6,
        out_specs=(vmem, vmem),
        cost_estimate=cost,
    )(state, w1p, b1p, w2p, b2p, u)

    return action[:, 0], probs_pad[:, :out_dim]


def init_params(key, input_dim, hidden_dim, output_dim):
    k1, k2, k3, k4 = jax.random.split(key, 4)
    # nn.Linear default init: U(-1/sqrt(fan_in), 1/sqrt(fan_in))
    lim1 = 1.0 / jnp.sqrt(input_dim)
    lim2 = 1.0 / jnp.sqrt(hidden_dim)
    w1 = jax.random.uniform(k1, (input_dim, hidden_dim), jnp.float32, -lim1, lim1)
    b1 = jax.random.uniform(k2, (1, hidden_dim), jnp.float32, -lim1, lim1)
    w2 = jax.random.uniform(k3, (hidden_dim, output_dim), jnp.float32, -lim2, lim2)
    b2 = jax.random.uniform(k4, (1, output_dim), jnp.float32, -lim2, lim2)
    return w1, b1, w2, b2


def pad_params(w1, b1, w2, b2):
    """One-time lane-dense padding (hidden -> 128, out -> 128). Do at init."""
    in_dim, hid = w1.shape
    out_dim = w2.shape[1]
    hid_p = _round_up(max(hid, LANES), LANES)
    out_p = _round_up(max(out_dim, LANES), LANES)
    w1p = jnp.zeros((in_dim, hid_p), jnp.float32).at[:, :hid].set(w1)
    b1p = jnp.zeros((1, hid_p), jnp.float32).at[:, :hid].set(b1)
    w2p = jnp.zeros((hid_p, out_p), jnp.float32).at[:hid, :out_dim].set(w2)
    b2p = jnp.zeros((1, out_p), jnp.float32).at[:, :out_dim].set(b2)
    return (w1p, b1p, w2p, b2p), out_dim


def ref_probs(state, w1, b1, w2, b2):
    h = jnp.maximum(state @ w1 + b1, 0.0)
    x = jax.nn.softmax(h @ w2 + b2, axis=-1)
    return jax.nn.softmax(x, axis=-1)


if __name__ == "__main__":
    key = jax.random.PRNGKey(0)
    k_param, k_state, k_sample = jax.random.split(key, 3)

    B, INPUT_DIM, HIDDEN_DIM, OUTPUT_DIM = 8, 16, 32, 8

    params = init_params(k_param, INPUT_DIM, HIDDEN_DIM, OUTPUT_DIM)
    padded_params, out_dim = pad_params(*params)
    state = jax.random.normal(k_state, (B, INPUT_DIM), jnp.float32)

    action, probs = actor_forward(state, padded_params, out_dim, k_sample)
    action = jax.block_until_ready(action)
    probs = jax.block_until_ready(probs)

    # sanity: shapes, valid probabilities, valid action indices, matches ref
    assert probs.shape == (B, OUTPUT_DIM)
    assert action.shape == (B,)
    assert jnp.allclose(jnp.sum(probs, axis=-1), 1.0, atol=1e-5)
    assert bool(jnp.all(action >= 0)) and bool(jnp.all(action < OUTPUT_DIM))
    assert jnp.allclose(probs, ref_probs(state, *params), atol=2e-3)

    print("KERNEL_OK")
</pallas_src>

<mosaic_0001>
module attributes {stable_mosaic.version = 11 : i64} {
  func.func @actor_kernel(%arg0: memref<8x16xf32, #tpu.memory_space<vmem>>, %arg1: memref<16x128xf32, #tpu.memory_space<vmem>>, %arg2: memref<1x128xf32, #tpu.memory_space<vmem>>, %arg3: memref<128x128xf32, #tpu.memory_space<vmem>>, %arg4: memref<1x128xf32, #tpu.memory_space<vmem>>, %arg5: memref<8x128xf32, #tpu.memory_space<vmem>>, %arg6: memref<8x128xf32, #tpu.memory_space<vmem>>, %arg7: memref<8x1xi32, #tpu.memory_space<vmem>>) attributes {dimension_semantics = [], scalar_prefetch = 0 : i64, scratch_operands = 0 : i64, tpu.core_type = #tpu.core_type<tc>} {
    %c0 = arith.constant 0 : index
    %c0_0 = arith.constant 0 : index
    %0 = vector.load %arg0[%c0, %c0_0] : memref<8x16xf32, #tpu.memory_space<vmem>>, vector<8x16xf32>
    %c0_1 = arith.constant 0 : index
    %c0_2 = arith.constant 0 : index
    %1 = vector.load %arg1[%c0_1, %c0_2] : memref<16x128xf32, #tpu.memory_space<vmem>>, vector<16x128xf32>
    %cst = arith.constant dense<0.000000e+00> : vector<8x128xf32>
    %2 = tpu.matmul %0, %1, %cst {dimension_numbers = #tpu.dot_dimension_numbers<[1], [0], [0], [1], [0, 0, 1, 1], [], []>} : vector<8x16xf32>, vector<16x128xf32>, vector<8x128xf32> -> vector<8x128xf32>
    %c0_3 = arith.constant 0 : index
    %c0_4 = arith.constant 0 : index
    %3 = vector.load %arg2[%c0_3, %c0_4] : memref<1x128xf32, #tpu.memory_space<vmem>>, vector<1x128xf32>
    %4 = vector.broadcast %3 : vector<1x128xf32> to vector<8x128xf32>
    %5 = arith.addf %2, %4 : vector<8x128xf32>
    %cst_5 = arith.constant 0.000000e+00 : f32
    %6 = vector.broadcast %cst_5 : f32 to vector<8x128xf32>
    %7 = arith.maximumf %5, %6 : vector<8x128xf32>
    %c0_6 = arith.constant 0 : index
    %c0_7 = arith.constant 0 : index
    %8 = vector.load %arg3[%c0_6, %c0_7] : memref<128x128xf32, #tpu.memory_space<vmem>>, vector<128x128xf32>
    %cst_8 = arith.constant dense<0.000000e+00> : vector<8x128xf32>
    %9 = tpu.matmul %7, %8, %cst_8 {dimension_numbers = #tpu.dot_dimension_numbers<[1], [0], [0], [1], [0, 0, 1, 1], [], []>} : vector<8x128xf32>, vector<128x128xf32>, vector<8x128xf32> -> vector<8x128xf32>
    %c0_9 = arith.constant 0 : index
    %c0_10 = arith.constant 0 : index
    %10 = vector.load %arg4[%c0_9, %c0_10] : memref<1x128xf32, #tpu.memory_space<vmem>>, vector<1x128xf32>
    %11 = vector.broadcast %10 : vector<1x128xf32> to vector<8x128xf32>
    %12 = arith.addf %9, %11 : vector<8x128xf32>
    %13 = tpu.iota {dimensions = array<i32: 1>} : vector<8x128xi32>
    %c8_i32 = arith.constant 8 : i32
    %14 = vector.broadcast %c8_i32 : i32 to vector<8x128xi32>
    %15 = arith.cmpi slt, %13, %14 : vector<8x128xi32>
    %cst_11 = arith.constant -1.000000e+30 : f32
    %16 = vector.broadcast %cst_11 : f32 to vector<8x128xf32>
    %17 = arith.select %15, %12, %16 : vector<8x128xi1>, vector<8x128xf32>
    %cst_12 = arith.constant dense<0xFF800000> : vector<8xf32>
    %18 = vector.multi_reduction <maximumf>, %17, %cst_12 [1] : vector<8x128xf32> to vector<8xf32>
    %19 = vector.shape_cast %18 : vector<8xf32> to vector<8x1xf32>
    %20 = vector.broadcast %19 : vector<8x1xf32> to vector<8x128xf32>
    %21 = arith.subf %17, %20 : vector<8x128xf32>
    %22 = math.exp %21 : vector<8x128xf32>
    %cst_13 = arith.constant dense<0.000000e+00> : vector<8xf32>
    %23 = vector.multi_reduction <add>, %22, %cst_13 [1] : vector<8x128xf32> to vector<8xf32>
    %24 = vector.shape_cast %23 : vector<8xf32> to vector<8x1xf32>
    %25 = tpu.reciprocal %24 {approx = true} : vector<8x1xf32> -> vector<8x1xf32>
    %26 = vector.broadcast %25 : vector<8x1xf32> to vector<8x128xf32>
    %27 = arith.mulf %22, %26 : vector<8x128xf32>
    %28 = math.exp %27 : vector<8x128xf32>
    %cst_14 = arith.constant 0.000000e+00 : f32
    %29 = vector.broadcast %cst_14 : f32 to vector<8x128xf32>
    %30 = arith.select %15, %28, %29 : vector<8x128xi1>, vector<8x128xf32>
    %cst_15 = arith.constant dense<0.000000e+00> : vector<8xf32>
    %31 = vector.multi_reduction <add>, %30, %cst_15 [1] : vector<8x128xf32> to vector<8xf32>
    %32 = vector.shape_cast %31 : vector<8xf32> to vector<8x1xf32>
    %33 = vector.broadcast %32 : vector<8x1xf32> to vector<8x128xf32>
    %34 = arith.divf %30, %33 : vector<8x128xf32>
    %c0_16 = arith.constant 0 : index
    %c0_17 = arith.constant 0 : index
    %35 = vector.load %arg6[%c0_16, %c0_17] : memref<8x128xf32, #tpu.memory_space<vmem>>, vector<8x128xf32>
    tpu.vector_store %arg6[%c0_16, %c0_17], %34 {strides = array<i32>} : memref<8x128xf32, #tpu.memory_space<vmem>>, vector<8x128xf32>,
    %c0_18 = arith.constant 0 : index
    %c0_19 = arith.constant 0 : index
    %36 = vector.load %arg5[%c0_18, %c0_19] : memref<8x128xf32, #tpu.memory_space<vmem>>, vector<8x128xf32>
    %37 = math.log %36 : vector<8x128xf32>
    %cst_20 = arith.constant 0.000000e+00 : f32
    %38 = vector.broadcast %cst_20 : f32 to vector<8x128xf32>
    %39 = arith.subf %38, %37 : vector<8x128xf32>
    %cst_21 = arith.constant 1.000000e+00 : f32
    %40 = vector.broadcast %cst_21 : f32 to vector<8x128xf32>
    %41 = arith.select %15, %30, %40 : vector<8x128xi1>, vector<8x128xf32>
    %42 = arith.divf %39, %41 : vector<8x128xf32>
    %cst_22 = arith.constant 1.000000e+30 : f32
    %43 = vector.broadcast %cst_22 : f32 to vector<8x128xf32>
    %44 = arith.select %15, %42, %43 : vector<8x128xi1>, vector<8x128xf32>
    %cst_23 = arith.constant dense<0x7F800000> : vector<8xf32>
    %45 = vector.multi_reduction <minimumf>, %44, %cst_23 [1] : vector<8x128xf32> to vector<8xf32>
    %46 = vector.shape_cast %45 : vector<8xf32> to vector<8x1xf32>
    %47 = vector.broadcast %46 : vector<8x1xf32> to vector<8x128xf32>
    %48 = arith.cmpf oeq, %44, %47 : vector<8x128xf32>
    %49 = arith.andi %48, %15 : vector<8x128xi1>
    %c128_i32 = arith.constant 128 : i32
    %50 = vector.broadcast %c128_i32 : i32 to vector<8x128xi32>
    %51 = arith.select %49, %13, %50 : vector<8x128xi1>, vector<8x128xi32>
    %cst_24 = arith.constant dense<2147483647> : vector<8xi32>
    %52 = vector.multi_reduction <minsi>, %51, %cst_24 [1] : vector<8x128xi32> to vector<8xi32>
    %53 = vector.shape_cast %52 : vector<8xi32> to vector<8x1xi32>
    %c0_25 = arith.constant 0 : index
    %c0_26 = arith.constant 0 : index
    %54 = vector.load %arg7[%c0_25, %c0_26] : memref<8x1xi32, #tpu.memory_space<vmem>>, vector<8x1xi32>
    tpu.vector_store %arg7[%c0_25, %c0_26], %53 {strides = array<i32>} : memref<8x1xi32, #tpu.memory_space<vmem>>, vector<8x1xi32>,
    return
  }
}

</mosaic_0001>

<bundles_post_ra>
// kernel: actor_forward.1
= control target key start
LH: loop header
LB: loop body
LE: loop exit
PB: predicated region body
PF: predicated region fallthrough
CT: control target
= control target key end

     0   :  { %13 = vsyncpa [#allocation3], 0  ;;  %s543_s0 = inlined_call_operand.vmem [shape: f32[8,16], index: 0, kind: input, shape index: {}]   ;;  %s544_s1 = inlined_call_operand.vmem [shape: f32[16,128], index: 1, kind: input, shape index: {}]   ;;  %s545_s2 = inlined_call_operand.vmem [shape: f32[1,128], index: 2, kind: input, shape index: {}]   ;;  %s546_s3 = inlined_call_operand.hbm [shape: f32[128,128], index: 3, kind: input, shape index: {}]   ;;  %s547_s4 = inlined_call_operand.vmem [shape: f32[1,128], index: 4, kind: input, shape index: {}]   ;;  %s548_s5 = inlined_call_operand.vmem [shape: f32[8,128], index: 5, kind: input, shape index: {}]   ;;  %s549_s6 = inlined_call_operand.hbm [shape: f32[8,128], index: 6, kind: output, shape index: {0}]   ;;  %s550_s7 = inlined_call_operand.vmem [shape: s32[8,1], index: 7, kind: output, shape index: {1}]  }
   0x1   :  { %14 = vsyncpa [#allocation4], 0  ;;  %s446_s24 = smov [#allocation2]   ;;  %s398_s28 = scalar_lea.hbm %s546_s3, 2048 }
   0x2   :  { %s26_s25 = sshll.u32 %s446_s24, 4  ;;  %p399_p0 = scmp.ne.s32.totalorder %s546_s3, %s398_s28  ;;  %s27_s25 = int_to_ptr.vmem [resolvable:$true] %s26_s25 }
   0x3   :  { %p402_p1 = scmp.lt.u32.totalorder %s398_s28, %s546_s3 }
   0x5   :  { %p404_p2 = pnand %p402_p1, %p399_p0 }
   0x7   :  { %407 = shalt.err (!%p404_p2)
}
   0x8   :  { %s408_s10 = scalar_lea.vmem %s27_s25, 2048  ;;  %p413_p4 = scmp.lt.s32.totalorder %s27_s25, %s27_s25 }
   0x9   :  { %p409_p3 = scmp.ne.s32.totalorder %s27_s25, %s408_s10  ;;  %p414_p5 = scmp.lt.s32.totalorder %s408_s10, %s408_s10 }
   0xb   :  { %p415_p6 = por %p414_p5, %p413_p4 }
   0xd   :  { %p416_p7 = pnand %p415_p6, %p409_p3 }
   0xf   :  { %419 = shalt.err (!%p416_p7)
}
  0x10   :  { %s447_s11 = smov 128   ;;  %s448_s12 = smov 8  }
  0x11   :  { %32 = dma.hbm_to_vmem [thread:$0]  %s546_s3, 2048, %s27_s25, [#allocation3], %s447_s11, %s447_s11, %s448_s12  }
  0x12   :  { %442 = dma.done.wait [#allocation3], 2048  }
  0x13   :  { %443 = vsyncadd [#allocation3], 4294965248  ;;  %v449_v0 = vmov 0.0|0.0   ;;  %vm450_vm0 = vmmov 0   ;;  %v451_v1 = vmov 0.0   ;;  %v41_v2 = vld [vmem:[%s544_s1] sm:$0xff]  ;;  %v218_v35 = vlaneseq }
  0x14   :  { %352 = vmatprep.subr.bf16.mxu0 %v449_v0  ;;  %314 = vmatprep.mubr.msk.f32.mxu0 %vm450_vm0, %v451_v1  ;;  %v42_v3 = vld [vmem:[%s544_s1 + $0x8] sm:$0xff]  ;;  %v125_v5 = vld [vmem:[#allocation2] sm:$0xff]  ;;  %v127_v7 = vld [vmem:[#allocation2 + $0x10] sm:$0xff]  ;;  %vm50_vm1 = vcmask 130048  }
  0x15   :  { %355 = vmatprep.subr.bf16.mxu1 %v449_v0  ;;  %349 = vmatprep.mubr.msk.f32.mxu1 %vm450_vm0, %v451_v1  ;;  %v353_v4 = vpack.c.bf16 %v42_v3, %v41_v2  ;;  %v126_v6 = vld [vmem:[#allocation2 + $0x8] sm:$0xff]  ;;  %v128_v9 = vld [vmem:[#allocation2 + $0x18] sm:$0xff]  ;;  %v40_v10 = vld [vmem:[%s543_s0] sm:$0xff]  ;;  %v219_v36 = vand.u32 127, %v218_v35 }
  0x16   :  { %v356_v8 = vpack.c.bf16 %v126_v6, %v125_v5  ;;  %v359_v11 = vpack.c.bf16 %v128_v9, %v127_v7  ;;  %v129_v12 = vld [vmem:[#allocation2 + $0x20] sm:$0xff]  ;;  %v130_v13 = vld [vmem:[#allocation2 + $0x28] sm:$0xff]  ;;  %v131_v15 = vld [vmem:[#allocation2 + $0x30] sm:$0xff] }
  0x17   :  { %354 = vmatpush3.bf16.msra.mxu0 %v353_v4  ;;  %v362_v14 = vpack.c.bf16 %v130_v13, %v129_v12  ;;  %v132_v16 = vld [vmem:[#allocation2 + $0x38] sm:$0xff]  ;;  %v133_v18 = vld [vmem:[#allocation2 + $0x40] sm:$0xff]  ;;  %v134_v19 = vld [vmem:[#allocation2 + $0x48] sm:$0xff]  ;;  %vm220_vm2 = vcmp.lt.s32.totalorder %v219_v36, 8 }
  0x18   :  { %357 = vmatpush3.bf16.msra.mxu1 %v356_v8  ;;  %v365_v17 = vpack.c.bf16 %v132_v16, %v131_v15  ;;  %v368_v20 = vpack.c.bf16 %v134_v19, %v133_v18  ;;  %v135_v21 = vld [vmem:[#allocation2 + $0x50] sm:$0xff]  ;;  %v136_v22 = vld [vmem:[#allocation2 + $0x58] sm:$0xff]  ;;  %v137_v24 = vld [vmem:[#allocation2 + $0x60] sm:$0xff] }
  0x19   :  { %358 = vmatprep.subr.bf16.mxu1 %v449_v0  ;;  %v371_v23 = vpack.c.bf16 %v136_v22, %v135_v21  ;;  %v138_v25 = vld [vmem:[#allocation2 + $0x68] sm:$0xff]  ;;  %v139_v27 = vld [vmem:[#allocation2 + $0x70] sm:$0xff]  ;;  %v140_v28 = vld [vmem:[#allocation2 + $0x78] sm:$0xff] }
  0x1a   :  { %315 = vmatmul.mubr.msk.f32.vlgmr.msra.gmra.mrb[0].mxu0 %vm50_vm1, %v40_v10  ;;  %v374_v26 = vpack.c.bf16 %v138_v25, %v137_v24  ;;  %v377_v29 = vpack.c.bf16 %v140_v28, %v139_v27  ;;  %v287_v30 = vld [vmem:[%s545_s2] ss:$0 sm:$0xff] }
  0x1b   :  { %v289_v37 = vld [vmem:[%s547_s4] ss:$0 sm:$0xff] }
  0x1c   :  { %360 = vmatpush3.bf16.msra.mxu1 %v359_v11  ;;  %v239_v50 = vld [vmem:[%s548_s5] sm:$0xff]  ;;  %s452_s5 = smov [#allocation5]  }
  0x1d   :  { %361 = vmatprep.subr.bf16.mxu1 %v449_v0  ;;  %s274_s22 = sshll.u32 %s452_s5, 4  ;;  %s275_s22 = int_to_ptr.vmem [resolvable:$true] %s274_s22 }
  0x1e   :  { %s420_s23 = scalar_lea.vmem %s275_s22, 128  ;;  %p425_p9 = scmp.lt.s32.totalorder %s275_s22, %s275_s22 }
  0x1f   :  { %p421_p8 = scmp.ne.s32.totalorder %s275_s22, %s420_s23  ;;  %p426_p10 = scmp.lt.s32.totalorder %s420_s23, %s420_s23 }
  0x20   :  { %363 = vmatpush3.bf16.msra.mxu1 %v362_v14 }
  0x21   :  { %364 = vmatprep.subr.bf16.mxu1 %v449_v0  ;;  %p427_p11 = por %p426_p10, %p425_p9 }
  0x23   :  { %p428_p12 = pnand %p427_p11, %p421_p8 }
  0x24   :  { %366 = vmatpush3.bf16.msra.mxu1 %v365_v17 }
  0x25   :  { %367 = vmatprep.subr.bf16.mxu1 %v449_v0 }
  0x28   :  { %369 = vmatpush3.bf16.msra.mxu1 %v368_v20 }
  0x29   :  { %370 = vmatprep.subr.bf16.mxu1 %v449_v0 }
  0x2c   :  { %372 = vmatpush3.bf16.msra.mxu1 %v371_v23 }
  0x2d   :  { %373 = vmatprep.subr.bf16.mxu1 %v449_v0 }
  0x30   :  { %375 = vmatpush3.bf16.msra.mxu1 %v374_v26 }
  0x31   :  { %376 = vmatprep.subr.bf16.mxu1 %v449_v0 }
  0x34   :  { %378 = vmatpush3.bf16.msra.mxu1 %v377_v29 }
  0xed   :  { %v120_v31 = vpop.f32.mrb[0].mxu0 }
  0xee   :  { %v121_v32 = vadd.f32 %v287_v30, %v120_v31  ;;  %v316_v33 = vpop.f32.mrb[1].mxu0 }
  0xf0   :  { %v124_v34 = vmax.f32 %v121_v32, 0.0 }
  0xf2   :  { %350 = vmatmul.mubr.f32.vlgmr.msra.gmra.mrb[0].mxu1 %v124_v34 }
 0x1c5   :  { %v214_v38 = vpop.f32.mrb[0].mxu1 }
 0x1c6   :  { %v215_v39 = vadd.f32 %v289_v37, %v214_v38  ;;  %v351_v40 = vpop.f32.mrb[1].mxu1 }
 0x1c8   :  { %v221_v41 = vsel %vm220_vm2, %v215_v39, -1e+30 }
 0x1c9   :  { %222 = vmax.xlane.f32.xlu0 %v221_v41 }
 0x256   :  { %v223_v42 = vpop.xlane.xlu0 %222 }
 0x257   :  { %v224_v43 = vsub.f32 %v221_v41, %v223_v42 }
 0x259   :  { %v225_v44 = vmul.f32 1.442695, %v224_v43 }
 0x25b   :  { %386 = vpow2.f32 %v225_v44 }
 0x265   :  { %v387_v45 = vpop.eup %386 }
 0x266   :  { %227 = vadd.xlane.f32.xlu0 %v387_v45 }
 0x2f3   :  { %v228_v46 = vpop.xlane.xlu0 %227 }
 0x2f4   :  { %388 = vrcp.f32 %v228_v46 }
 0x2fe   :  { %v389_v47 = vpop.eup %388 }
 0x2ff   :  { %v230_v48 = vmul.f32 %v389_v47, %v387_v45 }
 0x301   :  { %v231_v49 = vmul.f32 1.442695, %v230_v48 }
 0x303   :  { %390 = vpow2.f32 %v231_v49 }
 0x304   :  { %392 = vlog2.f32 %v239_v50 }
 0x30d   :  { %v391_v51 = vpop.eup %390 }
 0x30e   :  { %v233_v52 = vsel %vm220_vm2, %v391_v51, 0.0  ;;  %v243_v53 = vsel %vm220_vm2, %v391_v51, 1.0  ;;  %v393_v54 = vpop.eup %392 }
 0x30f   :  { %234 = vadd.xlane.f32.xlu0 %v233_v52  ;;  %394 = vrcp.f32 %v243_v53  ;;  %v241_v55 = vmul.f32 0.6931472, %v393_v54 }
 0x311   :  { %v242_v56 = vsub.f32 0.0, %v241_v55 }
 0x319   :  { %v395_v57 = vpop.eup %394 }
 0x31a   :  { %v245_v58 = vmul.f32 %v395_v57, %v242_v56 }
 0x31c   :  { %v246_v59 = vsel %vm220_vm2, %v245_v58, 1e+30 }
 0x31d   :  { %247 = vmin.xlane.f32.xlu1 %v246_v59 }
 0x39c   :  { %v235_v60 = vpop.xlane.xlu0 %234 }
 0x39d   :  { %396 = vrcp.f32 %v235_v60 }
 0x3a7   :  { %v397_v61 = vpop.eup %396 }
 0x3a8   :  { %v237_v62 = vmul.f32 %v397_v61, %v233_v52 }
 0x3aa   :  { %v248_v63 = vpop.xlane.xlu1 %247  ;;  %238 = vst [vmem:[#allocation5] sm:$0xff] %v237_v62 }
 0x3ab   :  { %vm249_vm3 = vcmp.eq.f32.partialorder %v246_v59, %v248_v63 }
 0x3ac   :  { %vm250_vm4 = vmand %vm249_vm3, %vm220_vm2 }
 0x3ad   :  { %v251_v0 = vsel %vm250_vm4, %v219_v36, 128 }
 0x3ae   :  { %v253_v1 = vshra.s32 %v251_v0, 16  ;;  %v252_v3 = vand.u32 65535, %v251_v0 }
 0x3b0   :  { %v255_v2 = vcvt.s32.f32 %v253_v1  ;;  %v254_v5 = vcvt.s32.f32 %v252_v3 }
 0x3b2   :  { %256 = vmin.xlane.f32.xlu1 %v255_v2 }
 0x43f   :  { %v257_v4 = vpop.xlane.xlu1 %256 }
 0x440   :  { %vm258_vm5 = vcmp.eq.f32.partialorder %v255_v2, %v257_v4 }
 0x441   :  { %v259_v6 = vsel %vm258_vm5, %v254_v5, inf }
 0x442   :  { %260 = vmin.xlane.f32.xlu1 %v259_v6 }
 0x443   :  { %431 = shalt.err (!%p428_p12)
}
 0x444   :  { %s432_s26 = scalar_lea.hbm %s549_s6, 128 }
 0x445   :  { %p433_p13 = scmp.ne.s32.totalorder %s549_s6, %s432_s26  ;;  %p436_p0 = scmp.lt.u32.totalorder %s432_s26, %s549_s6 }
 0x447   :  { %p438_p1 = pnand %p436_p0, %p433_p13 }
 0x449   :  { %441 = shalt.err (!%p438_p1)
}
 0x44a   :  { %277 = dma.vmem_to_hbm [thread:$0]  %s275_s22, 128, %s549_s6, [#allocation4]   ;;  %v263_v7 = vcvt.f32.s32 %v257_v4  ;;  %vm266_vm6 = vcmask 7168  }
 0x44c   :  { %v264_v9 = vshll.u32 %v263_v7, 16 }
 0x4cf   :  { %v261_v8 = vpop.xlane.xlu1 %260 }
 0x4d0   :  { %v262_v10 = vcvt.f32.s32 %v261_v8 }
 0x4d2   :  { %v265_v11 = vadd.s32 %v264_v9, %v262_v10 }
 0x4d4   :  { %267 = vst.msk [vmem:[%s550_s7] sm:$0xff] %vm266_vm6, %v265_v11 }
 0x4d5   :  { %444 = dma.done.wait [#allocation4], 128  }
 0x4d6   :  { %445 = vsyncadd [#allocation4], 4294967168 }
 0x4d7   :  { %285 = vsyncpa [#allocation3], 1 }
 0x4d8   :  { %286 = vsyncpa [#allocation4], 1 }

</bundles_post_ra>
